<compile_context>
chip_gen: v6e
topology: v6e:2x2x1
jax: 0.10.0
libtpu: 0.0.40
codegen_flags: <defaults>
</compile_context>

<pallas_src>
import functools

import jax
import jax.numpy as jnp
from jax.experimental import pallas as pl
from jax.experimental.pallas import tpu as pltpu


# ----------------------------------------------------------------------------
# Fused kernel: o = lrelu( lrelu(x @ w + b) * ow )
# ----------------------------------------------------------------------------
def _code_reduction_kernel(x_ref, w_ref, b_ref, ow_ref, o_ref, *, neg_slope):
    # x_ref : (tm, C)       bf16   -- tm = batch_tile * feat_hw rows
    # w_ref : (C, c_out)    bf16   -- full K x N, single step
    # b_ref : (1, c_out)    f32
    # ow_ref: (tm, c_out)   f32    -- orth weight, pre-tiled to the M tile
    # o_ref : (tm, c_out)   f32
    y = jnp.dot(x_ref[...], w_ref[...], preferred_element_type=jnp.float32)
    y = y + b_ref[...]                                  # bias (broadcast rows)
    y = jnp.where(y >= 0, y, y * neg_slope)             # LeakyReLU(0.2) (body)
    y = y * ow_ref[...]                                 # OrthorTransform mul
    y = jnp.where(y >= 0, y, y * neg_slope)             # final LeakyReLU(0.2)
    o_ref[...] = y.astype(o_ref.dtype)


def _pick_batch_tile(B, HW, target_rows=1024):
    """Largest divisor bt of B with bt*HW <= target_rows and sublane-aligned
    tile, preferring >= 2 grid steps so both v7x TensorCores get work."""
    divisors = [d for d in range(1, B + 1) if B % d == 0]
    ok = [d for d in divisors
          if d * HW <= target_rows and ((d * HW) % 8 == 0 or d == B)]
    if not ok:
        ok = [d for d in divisors if (d * HW) % 8 == 0 or d == B]
    multi = [d for d in ok if B // d >= 2]
    return max(multi) if multi else max(ok)


def code_reduction_forward(feat, w1, b1, orth_w, *, blocks, neg_slope=0.2,
                           batch_tile=None, compute_dtype=jnp.bfloat16):
    """CodeReduction forward.

    feat   : (B, feat_hw, c_dim)
    w1     : (c_out, c_dim)        nn.Linear weight (PyTorch layout), c_out = c_dim*blocks
    b1     : (c_out,)              nn.Linear bias
    orth_w : (1, feat_hw, c_out)   OrthorTransform weight
    returns (out (B, feat_hw, c_out) f32, weight (blocks, feat_hw*c_out//blocks))
    """
    B, HW, C = feat.shape
    c_out, C2 = w1.shape
    assert C2 == C
    assert orth_w.shape == (1, HW, c_out)
    assert c_out % blocks == 0

    if batch_tile is None:
        batch_tile = _pick_batch_tile(B, HW)
    assert B % batch_tile == 0
    tm = batch_tile * HW
    assert tm % 8 == 0 or batch_tile == B, "M tile must be sublane aligned"
    M = B * HW

    # Flatten batch*feat_hw into the M axis (contiguous -> free reshape).
    x2 = feat.reshape(M, C).astype(compute_dtype)
    wm = jnp.transpose(w1).astype(compute_dtype)                    # (C, c_out)
    b2 = b1.astype(jnp.float32).reshape(1, c_out)
    # Orth weight repeats every HW rows of the flattened M axis; pre-tile it
    # once to exactly one M tile (tiny) so the kernel stays purely 2D.
    ow_tile = jnp.tile(orth_w.reshape(HW, c_out).astype(jnp.float32),
                       (batch_tile, 1))                             # (tm, c_out)

    kernel = functools.partial(_code_reduction_kernel, neg_slope=neg_slope)

    out = pl.pallas_call(
        kernel,
        out_shape=jax.ShapeDtypeStruct((M, c_out), jnp.float32),
        grid_spec=pltpu.PrefetchScalarGridSpec(
            num_scalar_prefetch=0,
            grid=(M // tm,),
            in_specs=[
                pl.BlockSpec((tm, C), lambda i: (i, 0)),        # X tile
                pl.BlockSpec((C, c_out), lambda i: (0, 0)),     # W (resident)
                pl.BlockSpec((1, c_out), lambda i: (0, 0)),     # bias (resident)
                pl.BlockSpec((tm, c_out), lambda i: (0, 0)),    # orth weight tile
            ],
            out_specs=pl.BlockSpec((tm, c_out), lambda i: (i, 0)),
        ),
        compiler_params=pltpu.CompilerParams(
            dimension_semantics=("parallel",)),
    )(x2, wm, b2, ow_tile)

    out = out.reshape(B, HW, c_out)
    weight = orth_w.reshape(blocks, -1)      # weight.view(groups, -1)
    return out, weight


# ----------------------------------------------------------------------------
# Pure-JAX reference (same bf16 cast on x/W so the comparison is apples-to-apples)
# ----------------------------------------------------------------------------
def code_reduction_reference(feat, w1, b1, orth_w, *, blocks, neg_slope=0.2,
                             compute_dtype=jnp.bfloat16):
    B, HW, C = feat.shape
    c_out = w1.shape[0]
    y = jnp.dot(feat.reshape(B * HW, C).astype(compute_dtype),
                jnp.transpose(w1).astype(compute_dtype),
                preferred_element_type=jnp.float32) + b1.astype(jnp.float32)
    y = jnp.where(y >= 0, y, y * neg_slope).reshape(B, HW, c_out)
    y = y * orth_w.astype(jnp.float32)
    y = jnp.where(y >= 0, y, y * neg_slope)
    return y, orth_w.reshape(blocks, -1)


if __name__ == "__main__":
    key = jax.random.PRNGKey(0)
    k_feat, k_w1, k_b1, k_ow = jax.random.split(key, 4)

    # Small shapes consistent with the module: feat (B, feat_hw, c_dim),
    # Linear c_dim -> c_dim*blocks, OrthorTransform weight (1, feat_hw, c_dim*blocks).
    B, HW, C, blocks = 8, 64, 32, 4
    c_out = C * blocks                                   # 128 -> lane-dense output

    feat = jax.random.normal(k_feat, (B, HW, C), jnp.float32)
    bound = 1.0 / (C ** 0.5)                             # nn.Linear default init range
    w1 = jax.random.uniform(k_w1, (c_out, C), jnp.float32, -bound, bound)
    b1 = jax.random.uniform(k_b1, (c_out,), jnp.float32, -bound, bound)
    orth_w = jax.random.normal(k_ow, (1, HW, c_out), jnp.float32)   # torch.randn

    out, weight = code_reduction_forward(feat, w1, b1, orth_w, blocks=blocks)
    out = jax.block_until_ready(out)

    ref_out, ref_weight = code_reduction_reference(feat, w1, b1, orth_w,
                                                   blocks=blocks)

    assert out.shape == (B, HW, c_out), out.shape
    assert weight.shape == (blocks, HW * c_out // blocks), weight.shape
    max_err = float(jnp.max(jnp.abs(out - ref_out)))
    assert max_err < 1e-2, f"max abs error {max_err}"
    assert bool(jnp.all(weight == ref_weight))

    print("KERNEL_OK")
</pallas_src>

<mosaic_0001>
module attributes {stable_mosaic.version = 11 : i64} {
  func.func @_code_reduction_kernel(%arg0: i32, %arg1: memref<256x32xbf16, #tpu.memory_space<vmem>>, %arg2: memref<32x128xbf16, #tpu.memory_space<vmem>>, %arg3: memref<1x128xf32, #tpu.memory_space<vmem>>, %arg4: memref<256x128xf32, #tpu.memory_space<vmem>>, %arg5: memref<256x128xf32, #tpu.memory_space<vmem>>) attributes {dimension_semantics = [#tpu.dimension_semantics<parallel>], iteration_bounds = array<i64: 2>, scalar_prefetch = 0 : i64, scratch_operands = 0 : i64, tpu.core_type = #tpu.core_type<tc>, window_params = [{transform_indices = @transform_0, window_bounds = array<i64: 256, 32>}, {pipeline_mode = #tpu.pipeline_mode<synchronous>, transform_indices = @transform_1, window_bounds = array<i64: 32, 128>}, {pipeline_mode = #tpu.pipeline_mode<synchronous>, transform_indices = @transform_2, window_bounds = array<i64: 1, 128>}, {pipeline_mode = #tpu.pipeline_mode<synchronous>, transform_indices = @transform_3, window_bounds = array<i64: 256, 128>}, {transform_indices = @transform_4, window_bounds = array<i64: 256, 128>}]} {
    %c0 = arith.constant 0 : index
    %c0_0 = arith.constant 0 : index
    %0 = vector.load %arg1[%c0, %c0_0] : memref<256x32xbf16, #tpu.memory_space<vmem>>, vector<256x32xbf16>
    %c0_1 = arith.constant 0 : index
    %c0_2 = arith.constant 0 : index
    %1 = vector.load %arg2[%c0_1, %c0_2] : memref<32x128xbf16, #tpu.memory_space<vmem>>, vector<32x128xbf16>
    %cst = arith.constant dense<0.000000e+00> : vector<256x128xf32>
    %2 = tpu.matmul %0, %1, %cst {dimension_numbers = #tpu.dot_dimension_numbers<[1], [0], [0], [1], [0, 0, 1, 1], [], []>} : vector<256x32xbf16>, vector<32x128xbf16>, vector<256x128xf32> -> vector<256x128xf32>
    %c0_3 = arith.constant 0 : index
    %c0_4 = arith.constant 0 : index
    %3 = vector.load %arg3[%c0_3, %c0_4] : memref<1x128xf32, #tpu.memory_space<vmem>>, vector<1x128xf32>
    %4 = vector.broadcast %3 : vector<1x128xf32> to vector<256x128xf32>
    %5 = arith.addf %2, %4 : vector<256x128xf32>
    %cst_5 = arith.constant 0.000000e+00 : f32
    %6 = vector.broadcast %cst_5 : f32 to vector<256x128xf32>
    %7 = arith.cmpf oge, %5, %6 : vector<256x128xf32>
    %cst_6 = arith.constant 2.000000e-01 : f32
    %8 = vector.broadcast %cst_6 : f32 to vector<256x128xf32>
    %9 = arith.mulf %5, %8 : vector<256x128xf32>
    %10 = arith.select %7, %5, %9 : vector<256x128xi1>, vector<256x128xf32>
    %c0_7 = arith.constant 0 : index
    %c0_8 = arith.constant 0 : index
    %11 = vector.load %arg4[%c0_7, %c0_8] : memref<256x128xf32, #tpu.memory_space<vmem>>, vector<256x128xf32>
    %12 = arith.mulf %10, %11 : vector<256x128xf32>
    %cst_9 = arith.constant 0.000000e+00 : f32
    %13 = vector.broadcast %cst_9 : f32 to vector<256x128xf32>
    %14 = arith.cmpf oge, %12, %13 : vector<256x128xf32>
    %cst_10 = arith.constant 2.000000e-01 : f32
    %15 = vector.broadcast %cst_10 : f32 to vector<256x128xf32>
    %16 = arith.mulf %12, %15 : vector<256x128xf32>
    %17 = arith.select %14, %12, %16 : vector<256x128xi1>, vector<256x128xf32>
    %c0_11 = arith.constant 0 : index
    %c0_12 = arith.constant 0 : index
    %18 = vector.load %arg5[%c0_11, %c0_12] : memref<256x128xf32, #tpu.memory_space<vmem>>, vector<256x128xf32>
    tpu.vector_store %arg5[%c0_11, %c0_12], %17 {strides = array<i32>} : memref<256x128xf32, #tpu.memory_space<vmem>>, vector<256x128xf32>,
    return
  }
  func.func @transform_0(%arg0: i32) -> (i32, i32) {
    %c0_i32 = arith.constant 0 : i32
    %c0_i32_0 = arith.constant 0 : i32
    return %arg0, %c0_i32 : i32, i32
  }
  func.func @transform_1(%arg0: i32) -> (i32, i32) {
    %c0_i32 = arith.constant 0 : i32
    %c0_i32_0 = arith.constant 0 : i32
    %c0_i32_1 = arith.constant 0 : i32
    return %c0_i32, %c0_i32_0 : i32, i32
  }
  func.func @transform_2(%arg0: i32) -> (i32, i32) {
    %c0_i32 = arith.constant 0 : i32
    %c0_i32_0 = arith.constant 0 : i32
    %c0_i32_1 = arith.constant 0 : i32
    return %c0_i32, %c0_i32_0 : i32, i32
  }
  func.func @transform_3(%arg0: i32) -> (i32, i32) {
    %c0_i32 = arith.constant 0 : i32
    %c0_i32_0 = arith.constant 0 : i32
    %c0_i32_1 = arith.constant 0 : i32
    return %c0_i32, %c0_i32_0 : i32, i32
  }
  func.func @transform_4(%arg0: i32) -> (i32, i32) {
    %c0_i32 = arith.constant 0 : i32
    %c0_i32_0 = arith.constant 0 : i32
    return %arg0, %c0_i32 : i32, i32
  }
}

</mosaic_0001>

<bundles_post_ra>
// kernel: tpu_custom_call.1
= control target key start
LH: loop header
LB: loop body
LE: loop exit
PB: predicated region body
PF: predicated region fallthrough
CT: control target
= control target key end

     0   :  { %9 = vsyncpa [#allocation3], 0  ;;  %s1480_s0 = inlined_call_operand.vmem [shape: bf16[512,32], index: 0, kind: input, shape index: {}]   ;;  %s1481_s1 = inlined_call_operand.vmem [shape: bf16[32,128], index: 1, kind: input, shape index: {}]   ;;  %s1482_s2 = inlined_call_operand.vmem [shape: f32[1,128], index: 2, kind: input, shape index: {}]   ;;  %s1483_s3 = inlined_call_operand.vmem [shape: f32[256,128], index: 3, kind: input, shape index: {}]   ;;  %s1484_s4 = inlined_call_operand.hbm [shape: f32[512,128], index: 4, kind: output, shape index: {}]  }
   0x1   :  { %11 = vsyncpa [#allocation3 + $0x1], 0  ;;  %s1164_s15 = smov 0   ;;  %s1166_s16 = smov 0  }
   0x2   :  { %s1168_s17 = smov 0   ;;  %s1170_s18 = smov 0  }
   0x3 LB: > { %s1185_s19 = sadd.s32 4294967295, %s1134_s18   ;;  %s909_s20 = sadd.s32 4294967294, %s1134_s18   ;;  %s1134_s18 = sphi %s1170_s18, %s1490_s18   ;;  %s1130_s17 = sphi %s1168_s17, %s1489_s17   ;;  %s1126_s16 = sphi %s1166_s16, %s1488_s16   ;;  %s1122_s15 = sphi %s1164_s15, %s1487_s15  }
   0x4   : > { %s1189_s21 = sadd.s32 1, %s1134_s18   ;;  %s113_s22 = sadd.s32 1, %s1130_s17 }
   0x5   : > { %s110_s23 = ssub.s32 %s1134_s18, %s1189_s21  ;;  %p123_p0 = scmp.ne.s32.totalorder %s1130_s17, %s1126_s16 }
   0x6   : > { %p111_p1 = scmp.eq.s32.totalorder %s110_s23, 0  ;;  %p124_p2 = scmp.eq.s32.totalorder %s1185_s19, 1 }
   0x7   : > { %p129_p3 = scmp.ne.s32.totalorder %s1126_s16, %s1122_s15  ;;  %p130_p4 = scmp.eq.s32.totalorder %s909_s20, 1 }
   0x8   : > { %s1200_s24 = scalar_select %p111_p1, %s1130_s17, %s113_s22  }
   0x9   : > { %p1202_p5 = por %p124_p2, %p123_p0  ;;  %p1206_p6 = por %p130_p4, %p129_p3 }
   0xa   : > { %p912_p7 = scmp.ge.s32.totalorder %s1134_s18, 1  ;;  %p166_p8 = scmp.lt.s32.totalorder %s1134_s18, 3 }
   0xc   : > { %p167_p9 = pnand %p912_p7, %p166_p8 }
   0xd   : > { %s914_s29 = sshll.u32 (!%p167_p9), %s1185_s19, 5  ;;  %s189_s12 = sand.u32 (!%p167_p9), 1, %s1126_s16  }
   0xe   : > { %170 = sbr.rel (%p167_p9) target bundleno = 306 (0x132), region = 36  ;;  %p193_p10 = scmp.lt.s32.totalorder (!%p167_p9), %s914_s29, 63 }
   0xf   : > { %s1274_s23 = sshll.u32 (!%p167_p9), %s189_s12, 8  ;;  %s956_s27 = sshll.u32 (!%p167_p9), %s1185_s19, 12 }
  0x10   : > { %s1287_s7 = scalar_lea.vmem (!%p167_p9), [#allocation2], %s1274_s23  ;;  %s1432_s5 = scalar_lea.hbm (!%p167_p9), %s1484_s4, %s956_s27 }
  0x11   : > { %s847_s28 = sshll.u32 (!%p167_p9), %s1287_s7, 4  ;;  %s1440_s19 = scalar_lea.sflag (!%p167_p9), [#allocation3], %s189_s12  ;;  %s1434_s28 = int_to_ptr.vmem [resolvable:$true] %s847_s28 }
  0x12   : > { %s1136_s8 = smov (!%p167_p9), [#allocation2]  }
  0x13   : > { %v1056_v0 = vld [vmem:[%s1481_s1 + $0x8] sm:$0xff]   ;;  %v1057_v1 = vld [vmem:[%s1481_s1] sm:$0xff]   ;;  %s1492_s29 = smov (!%p193_p10, %s914_s29), 63  ;;  %vm335_vm0 = vcmask 261120   ;;  %v643_v25 = vld [vmem:[%s1483_s3 + $0x10] sm:$0xff] }
  0x14   : > { %975 = vmatprep.subr.bf16.mxu0 %v1056_v0  ;;  %1011 = vmatprep.subr.bf16.mxu1 %v1056_v0  ;;  %s915_s6 = sshll.u32 %s1492_s29, 2  ;;  %v1259_v18 = vld [vmem:[%s1482_s2] ss:$0 sm:$0xff]  ;;  %v659_v29 = vld [vmem:[%s1483_s3 + $0x90] sm:$0xff]  ;;  %v644_v45 = vld [vmem:[%s1483_s3 + $0x18] sm:$0xff] }
  0x15   : > { %976 = vmatpush3.bf16.msra.mxu0 %v1056_v0  ;;  %1013 = vmatpush3.bf16.msra.mxu1 %v1056_v0  ;;  %s1222_s9 = scalar_lea.vmem %s1480_s0, %s915_s6  ;;  %v641_v34 = vld [vmem:[%s1483_s3] sm:$0xff]  ;;  %s1074_s6 = scalar_lea.vmem %s1434_s28, 4096 }
  0x16   : > { %977 = vmatprep.subr.bf16.mxu0 %v1057_v1  ;;  %1012 = vmatprep.subr.bf16.mxu1 %v1057_v1  ;;  %v1058_v2 = vld [vmem:[%s1222_s9] sm:$0xff]   ;;  %v1060_v4 = vld [vmem:[%s1222_s9 + $0x8] sm:$0xff]   ;;  %v1062_v6 = vld [vmem:[%s1222_s9 + $0x10] sm:$0xff]   ;;  %p1075_p11 = scmp.ne.s32.totalorder %s1434_s28, %s1074_s6 }
  0x17   : > { %v1059_v3 = vld [vmem:[%s1222_s9 + $0x40] sm:$0xff]   ;;  %979 = vmatprep.mubr.msk.bf16.mxu0 %vm335_vm0, %v1058_v2  ;;  %v1061_v5 = vld [vmem:[%s1222_s9 + $0x48] sm:$0xff]   ;;  %v1063_v7 = vld [vmem:[%s1222_s9 + $0x50] sm:$0xff]  }
  0x18   : > { %995 = vmatprep.mubr.msk.bf16.mxu1 %vm335_vm0, %v1059_v3  ;;  %v1064_v8 = vld [vmem:[%s1222_s9 + $0x18] sm:$0xff]   ;;  %v1066_v10 = vld [vmem:[%s1222_s9 + $0x20] sm:$0xff]   ;;  %v1068_v12 = vld [vmem:[%s1222_s9 + $0x28] sm:$0xff]   ;;  %p1076_p12 = pnand %p1075_p11, %p1202_p5 }
  0x19   : > { %978 = vmatpush3.bf16.msra.mxu0 %v1057_v1  ;;  %1014 = vmatpush3.bf16.msra.mxu1 %v1057_v1  ;;  %v1065_v9 = vld [vmem:[%s1222_s9 + $0x58] sm:$0xff]   ;;  %v1067_v11 = vld [vmem:[%s1222_s9 + $0x60] sm:$0xff]   ;;  %v1069_v13 = vld [vmem:[%s1222_s9 + $0x68] sm:$0xff]  }
  0x1a   : > { %v1070_v14 = vld [vmem:[%s1222_s9 + $0x30] sm:$0xff]   ;;  %v1072_v16 = vld [vmem:[%s1222_s9 + $0x38] sm:$0xff]   ;;  %v657_v40 = vld [vmem:[%s1483_s3 + $0x80] sm:$0xff]  ;;  %p1077_p13 = pneg %p1076_p12 }
  0x1b   : > { %v1071_v15 = vld [vmem:[%s1222_s9 + $0x70] sm:$0xff]   ;;  %v1073_v17 = vld [vmem:[%s1222_s9 + $0x78] sm:$0xff]   ;;  %s1078_s9 = sshll.u32 %s1136_s8, 4  ;;  %s1079_s9 = int_to_ptr.vmem [resolvable:$false] %s1078_s9 }
  0x1c   : > { %980 = vmatmul.mubr.msk.bf16.vlgmr.msra.gmra.mxu0 %vm335_vm0, %v1060_v4  ;;  %996 = vmatmul.mubr.msk.bf16.vlgmr.msra.gmra.mxu1 %vm335_vm0, %v1061_v5  ;;  %v660_v2 = vld [vmem:[%s1483_s3 + $0x98] sm:$0xff]  ;;  %s1080_s10 = scalar_lea.vmem %s1079_s9, 8192  ;;  %p1081_p0 = scmp.lt.s32.totalorder %s1434_s28, %s1079_s9 }
  0x1d   : > { %983 = vmatprep.mubr.msk.bf16.mxu0 %vm335_vm0, %v1062_v6  ;;  %999 = vmatprep.mubr.msk.bf16.mxu1 %vm335_vm0, %v1063_v7  ;;  %v642_v6 = vld [vmem:[%s1483_s3 + $0x8] sm:$0xff]  ;;  %p1082_p1 = scmp.lt.s32.totalorder %s1080_s10, %s1074_s6 }
  0x1f   : > { %p1083_p2 = por %p1082_p1, %p1081_p0 }
  0x21   : > { %p1084_p3 = pnand %p1083_p2, %p1077_p13 }
  0x24   : > { %984 = vmatmul.mubr.msk.bf16.gmra.mxu0 %vm335_vm0, %v1064_v8  ;;  %1000 = vmatmul.mubr.msk.bf16.gmra.mxu1 %vm335_vm0, %v1065_v9 }
  0x25   : > { %987 = vmatprep.mubr.msk.bf16.mxu0 %vm335_vm0, %v1066_v10  ;;  %1003 = vmatprep.mubr.msk.bf16.mxu1 %vm335_vm0, %v1067_v11  ;;  %v658_v11 = vld [vmem:[%s1483_s3 + $0x88] sm:$0xff] }
  0x2c   : > { %988 = vmatmul.mubr.msk.bf16.gmra.mxu0 %vm335_vm0, %v1068_v12  ;;  %1004 = vmatmul.mubr.msk.bf16.gmra.mxu1 %vm335_vm0, %v1069_v13 }
  0x2d   : > { %991 = vmatprep.mubr.msk.bf16.mxu0 %vm335_vm0, %v1070_v14  ;;  %1007 = vmatprep.mubr.msk.bf16.mxu1 %vm335_vm0, %v1071_v15 }
  0x34   : > { %992 = vmatmul.mubr.msk.bf16.gmra.mxu0 %vm335_vm0, %v1072_v16  ;;  %1008 = vmatmul.mubr.msk.bf16.gmra.mxu1 %vm335_vm0, %v1073_v17  ;;  %v647_v16 = vld [vmem:[%s1483_s3 + $0x30] sm:$0xff] }
  0xdc   : > { %v981_v19 = vpop.f32.mrf.mxu0  ;;  %v997_v21 = vpop.f32.mrf.mxu1 }
  0xdd   : > { %v427_v20 = vadd.f32 %v981_v19, %v1259_v18  ;;  %v491_v22 = vadd.f32 %v997_v21, %v1259_v18 }
  0xde   : > { %v418_v23 = vpop.f32.mrf.mxu0  ;;  %v482_v27 = vpop.f32.mrf.mxu1 }
  0xdf   : > { %vm547_vm1 = vcmp.ge.f32.partialorder %v427_v20, 0.0  ;;  %v579_v24 = vmul.f32 0.2, %v427_v20  ;;  %v419_v26 = vadd.f32 %v1259_v18, %v418_v23  ;;  %vm563_vm2 = vcmp.ge.f32.partialorder %v491_v22, 0.0 }
  0xe0   : > { %v595_v28 = vmul.f32 0.2, %v491_v22  ;;  %v483_v30 = vadd.f32 %v1259_v18, %v482_v27  ;;  %v982_v31 = vpop.f32.mrf.mxu0  ;;  %v998_v36 = vpop.f32.mrf.mxu1 }
  0xe1   : > { %v611_v32 = vsel %vm547_vm1, %v427_v20, %v579_v24  ;;  %vm545_vm3 = vcmp.ge.f32.partialorder %v419_v26, 0.0  ;;  %v577_v33 = vmul.f32 0.2, %v419_v26  ;;  %v430_v35 = vadd.f32 %v982_v31, %v1259_v18 }
  0xe2   : > { %v675_v37 = vmul.f32 %v643_v25, %v611_v32  ;;  %v627_v38 = vsel %vm563_vm2, %v491_v22, %v595_v28  ;;  %vm561_vm4 = vcmp.ge.f32.partialorder %v483_v30, 0.0  ;;  %v593_v39 = vmul.f32 0.2, %v483_v30  ;;  %v421_v41 = vpop.f32.mrf.mxu0  ;;  %v485_v49 = vpop.f32.mrf.mxu1  ;;  %v663_v22 = vld [vmem:[%s1483_s3 + $0xb0] sm:$0xff] }
  0xe3   : > { %v691_v42 = vmul.f32 %v659_v29, %v627_v38  ;;  %v609_v43 = vsel %vm545_vm3, %v419_v26, %v577_v33  ;;  %vm548_vm5 = vcmp.ge.f32.partialorder %v430_v35, 0.0  ;;  %v580_v44 = vmul.f32 0.2, %v430_v35 }
  0xe4   : > { %vm707_vm6 = vcmp.ge.f32.partialorder %v675_v37, 0.0  ;;  %v739_v46 = vmul.f32 0.2, %v675_v37  ;;  %v673_v47 = vmul.f32 %v641_v34, %v609_v43  ;;  %v625_v48 = vsel %vm561_vm4, %v483_v30, %v593_v39  ;;  %v985_v56 = vpop.f32.mrf.mxu0  ;;  %v1001_v63 = vpop.f32.mrf.mxu1  ;;  %v645_v43 = vld [vmem:[%s1483_s3 + $0x20] sm:$0xff] }
  0xe5   : > { %vm723_vm7 = vcmp.ge.f32.partialorder %v691_v42, 0.0  ;;  %v755_v50 = vmul.f32 0.2, %v691_v42  ;;  %v689_v51 = vmul.f32 %v657_v40, %v625_v48  ;;  %v612_v52 = vsel %vm548_vm5, %v430_v35, %v580_v44 }
  0xe6   : > { %v771_v53 = vsel %vm707_vm6, %v675_v37, %v739_v46  ;;  %vm705_vm8 = vcmp.ge.f32.partialorder %v673_v47, 0.0  ;;  %v737_v54 = vmul.f32 0.2, %v673_v47  ;;  %v676_v55 = vmul.f32 %v644_v45, %v612_v52  ;;  %v434_v8 = vpop.f32.mrf.mxu0  ;;  %v498_v17 = vpop.f32.mrf.mxu1  ;;  %v648_v52 = vld [vmem:[%s1483_s3 + $0x38] sm:$0xff] }
  0xe7   : > { %803 = vst [vmem:[%s1287_s7 + $0x10] sm:$0xff] %v771_v53  ;;  %v787_v57 = vsel %vm723_vm7, %v691_v42, %v755_v50  ;;  %vm721_vm9 = vcmp.ge.f32.partialorder %v689_v51, 0.0  ;;  %v753_v58 = vmul.f32 0.2, %v689_v51  ;;  %v494_v59 = vadd.f32 %v998_v36, %v1259_v18 }
  0xe8   : > { %819 = vst [vmem:[%s1287_s7 + $0x90] sm:$0xff] %v787_v57  ;;  %v769_v60 = vsel %vm705_vm8, %v673_v47, %v737_v54  ;;  %vm708_vm10 = vcmp.ge.f32.partialorder %v676_v55, 0.0  ;;  %v740_v61 = vmul.f32 0.2, %v676_v55  ;;  %v422_v62 = vadd.f32 %v1259_v18, %v421_v41  ;;  %v986_v26 = vpop.f32.mrf.mxu0  ;;  %v1002_v33 = vpop.f32.mrf.mxu1  ;;  %v661_v47 = vld [vmem:[%s1483_s3 + $0xa0] sm:$0xff]  ;;  %v664_v57 = vld [vmem:[%s1483_s3 + $0xb8] sm:$0xff] }
  0xe9   : > { %801 = vst [vmem:[%s1287_s7] sm:$0xff] %v769_v60  ;;  %v785_v0 = vsel %vm721_vm9, %v689_v51, %v753_v58  ;;  %vm564_vm11 = vcmp.ge.f32.partialorder %v494_v59, 0.0  ;;  %v596_v1 = vmul.f32 0.2, %v494_v59  ;;  %v486_v3 = vadd.f32 %v1259_v18, %v485_v49 }
  0xea   : > { %817 = vst [vmem:[%s1287_s7 + $0x80] sm:$0xff] %v785_v0  ;;  %v772_v4 = vsel %vm708_vm10, %v676_v55, %v740_v61  ;;  %vm546_vm12 = vcmp.ge.f32.partialorder %v422_v62, 0.0  ;;  %v578_v5 = vmul.f32 0.2, %v422_v62  ;;  %v443_v7 = vadd.f32 %v985_v56, %v1259_v18  ;;  %v437_v40 = vpop.f32.mrf.mxu0  ;;  %v501_v49 = vpop.f32.mrf.mxu1 }
  0xeb   : > { %804 = vst [vmem:[%s1287_s7 + $0x18] sm:$0xff] %v772_v4  ;;  %v628_v9 = vsel %vm564_vm11, %v494_v59, %v596_v1  ;;  %vm562_vm13 = vcmp.ge.f32.partialorder %v486_v3, 0.0  ;;  %v594_v10 = vmul.f32 0.2, %v486_v3  ;;  %v507_v12 = vadd.f32 %v1001_v63, %v1259_v18 }
  0xec   : > { %v692_v13 = vmul.f32 %v660_v2, %v628_v9  ;;  %v610_v14 = vsel %vm546_vm12, %v422_v62, %v578_v5  ;;  %vm551_vm14 = vcmp.ge.f32.partialorder %v443_v7, 0.0  ;;  %v583_v15 = vmul.f32 0.2, %v443_v7  ;;  %v989_v58 = vpop.f32.mrf.mxu0  ;;  %v646_v62 = vld [vmem:[%s1483_s3 + $0x28] sm:$0xff]  ;;  %v1005_v2 = vpop.f32.mrf.mxu1 }
  0xed   : > { %v674_v19 = vmul.f32 %v642_v6, %v610_v14  ;;  %v626_v20 = vsel %vm562_vm13, %v486_v3, %v594_v10  ;;  %vm567_vm15 = vcmp.ge.f32.partialorder %v507_v12, 0.0  ;;  %v599_v21 = vmul.f32 0.2, %v507_v12 }
  0xee   : > { %vm724_vm0 = vcmp.ge.f32.partialorder %v692_v13, 0.0  ;;  %v756_v23 = vmul.f32 0.2, %v692_v13  ;;  %v690_v24 = vmul.f32 %v658_v11, %v626_v20  ;;  %v615_v25 = vsel %vm551_vm14, %v443_v7, %v583_v15  ;;  %v450_v9 = vpop.f32.mrf.mxu0  ;;  %v662_v20 = vld [vmem:[%s1483_s3 + $0xa8] sm:$0xff] }
  0xef   : > { %vm706_vm1 = vcmp.ge.f32.partialorder %v674_v19, 0.0  ;;  %v738_v27 = vmul.f32 0.2, %v674_v19  ;;  %v679_v28 = vmul.f32 %v647_v16, %v615_v25  ;;  %v631_v29 = vsel %vm567_vm15, %v507_v12, %v599_v21  ;;  %v514_v16 = vpop.f32.mrf.mxu1 }
  0xf0   : > { %v788_v30 = vsel %vm724_vm0, %v692_v13, %v756_v23  ;;  %vm722_vm2 = vcmp.ge.f32.partialorder %v690_v24, 0.0  ;;  %v754_v31 = vmul.f32 0.2, %v690_v24  ;;  %v695_v32 = vmul.f32 %v663_v22, %v631_v29  ;;  %v667_v29 = vld [vmem:[%s1483_s3 + $0xd0] sm:$0xff] }
  0xf1   : > { %820 = vst [vmem:[%s1287_s7 + $0x98] sm:$0xff] %v788_v30  ;;  %v770_v34 = vsel %vm706_vm1, %v674_v19, %v738_v27  ;;  %vm711_vm3 = vcmp.ge.f32.partialorder %v679_v28, 0.0  ;;  %v743_v35 = vmul.f32 0.2, %v679_v28  ;;  %v435_v36 = vadd.f32 %v1259_v18, %v434_v8 }
  0xf2   : > { %802 = vst [vmem:[%s1287_s7 + $0x8] sm:$0xff] %v770_v34  ;;  %v786_v37 = vsel %vm722_vm2, %v690_v24, %v754_v31  ;;  %vm727_vm4 = vcmp.ge.f32.partialorder %v695_v32, 0.0  ;;  %v759_v38 = vmul.f32 0.2, %v695_v32  ;;  %v499_v39 = vadd.f32 %v1259_v18, %v498_v17  ;;  %v651_v24 = vld [vmem:[%s1483_s3 + $0x50] sm:$0xff]  ;;  %v649_v34 = vld [vmem:[%s1483_s3 + $0x40] sm:$0xff] }
  0xf3   : > { %818 = vst [vmem:[%s1287_s7 + $0x88] sm:$0xff] %v786_v37  ;;  %v775_v41 = vsel %vm711_vm3, %v679_v28, %v743_v35  ;;  %vm549_vm5 = vcmp.ge.f32.partialorder %v435_v36, 0.0  ;;  %v581_v42 = vmul.f32 0.2, %v435_v36  ;;  %v446_v44 = vadd.f32 %v986_v26, %v1259_v18  ;;  %v990_v26 = vpop.f32.mrf.mxu0  ;;  %v1006_v35 = vpop.f32.mrf.mxu1 }
  0xf4   : > { %807 = vst [vmem:[%s1287_s7 + $0x30] sm:$0xff] %v775_v41  ;;  %v791_v45 = vsel %vm727_vm4, %v695_v32, %v759_v38  ;;  %vm565_vm6 = vcmp.ge.f32.partialorder %v499_v39, 0.0  ;;  %v597_v46 = vmul.f32 0.2, %v499_v39  ;;  %v510_v48 = vadd.f32 %v1002_v33, %v1259_v18 }
  0xf5   : > { %823 = vst [vmem:[%s1287_s7 + $0xb0] sm:$0xff] %v791_v45  ;;  %v613_v50 = vsel %vm549_vm5, %v435_v36, %v581_v42  ;;  %vm552_vm7 = vcmp.ge.f32.partialorder %v446_v44, 0.0  ;;  %v584_v51 = vmul.f32 0.2, %v446_v44  ;;  %v438_v53 = vadd.f32 %v1259_v18, %v437_v40 }
  0xf6   : > { %v677_v54 = vmul.f32 %v645_v43, %v613_v50  ;;  %v629_v55 = vsel %vm565_vm6, %v499_v39, %v597_v46  ;;  %vm568_vm8 = vcmp.ge.f32.partialorder %v510_v48, 0.0  ;;  %v600_v56 = vmul.f32 0.2, %v510_v48  ;;  %v665_v39 = vld [vmem:[%s1483_s3 + $0xc0] sm:$0xff]  ;;  %v453_v43 = vpop.f32.mrf.mxu0  ;;  %v517_v50 = vpop.f32.mrf.mxu1 }
  0xf7   : > { %v693_v59 = vmul.f32 %v661_v47, %v629_v55  ;;  %v616_v60 = vsel %vm552_vm7, %v446_v44, %v584_v51  ;;  %vm550_vm9 = vcmp.ge.f32.partialorder %v438_v53, 0.0  ;;  %v582_v61 = vmul.f32 0.2, %v438_v53 }
  0xf8   : > { %vm709_vm10 = vcmp.ge.f32.partialorder %v677_v54, 0.0  ;;  %v741_v63 = vmul.f32 0.2, %v677_v54  ;;  %v680_v0 = vmul.f32 %v648_v52, %v616_v60  ;;  %v632_v1 = vsel %vm568_vm8, %v510_v48, %v600_v56  ;;  %v652_v60 = vld [vmem:[%s1483_s3 + $0x58] sm:$0xff] }
  0xf9   : > { %vm725_vm11 = vcmp.ge.f32.partialorder %v693_v59, 0.0  ;;  %v757_v3 = vmul.f32 0.2, %v693_v59  ;;  %v696_v4 = vmul.f32 %v664_v57, %v632_v1  ;;  %v614_v5 = vsel %vm550_vm9, %v438_v53, %v582_v61  ;;  %v993_v57 = vpop.f32.mrf.mxu0 }
  0xfa   : > { %v773_v6 = vsel %vm709_vm10, %v677_v54, %v741_v63  ;;  %vm712_vm12 = vcmp.ge.f32.partialorder %v680_v0, 0.0  ;;  %v744_v7 = vmul.f32 0.2, %v680_v0  ;;  %v678_v8 = vmul.f32 %v646_v62, %v614_v5  ;;  %v650_v5 = vld [vmem:[%s1483_s3 + $0x48] sm:$0xff] }
  0xfb   : > { %805 = vst [vmem:[%s1287_s7 + $0x20] sm:$0xff] %v773_v6  ;;  %v789_v10 = vsel %vm725_vm11, %v693_v59, %v757_v3  ;;  %vm728_vm13 = vcmp.ge.f32.partialorder %v696_v4, 0.0  ;;  %v760_v11 = vmul.f32 0.2, %v696_v4  ;;  %v502_v12 = vadd.f32 %v1259_v18, %v501_v49 }
  0xfc   : > { %821 = vst [vmem:[%s1287_s7 + $0xa0] sm:$0xff] %v789_v10  ;;  %v776_v13 = vsel %vm712_vm12, %v680_v0, %v744_v7  ;;  %vm710_vm14 = vcmp.ge.f32.partialorder %v678_v8, 0.0  ;;  %v742_v14 = vmul.f32 0.2, %v678_v8  ;;  %v459_v15 = vadd.f32 %v989_v58, %v1259_v18  ;;  %v668_v0 = vld [vmem:[%s1483_s3 + $0xd8] sm:$0xff]  ;;  %v666_v10 = vld [vmem:[%s1483_s3 + $0xc8] sm:$0xff] }
  0xfd   : > { %808 = vst [vmem:[%s1287_s7 + $0x38] sm:$0xff] %v776_v13  ;;  %v792_v17 = vsel %vm728_vm13, %v696_v4, %v760_v11  ;;  %vm566_vm15 = vcmp.ge.f32.partialorder %v502_v12, 0.0  ;;  %v598_v19 = vmul.f32 0.2, %v502_v12  ;;  %v523_v21 = vadd.f32 %v1005_v2, %v1259_v18  ;;  %v1009_v2 = vpop.f32.mrf.mxu1 }
  0xfe   : > { %824 = vst [vmem:[%s1287_s7 + $0xb8] sm:$0xff] %v792_v17  ;;  %v774_v22 = vsel %vm710_vm14, %v678_v8, %v742_v14  ;;  %vm555_vm0 = vcmp.ge.f32.partialorder %v459_v15, 0.0  ;;  %v587_v23 = vmul.f32 0.2, %v459_v15  ;;  %v451_v25 = vadd.f32 %v1259_v18, %v450_v9  ;;  %v655_v14 = vld [vmem:[%s1483_s3 + $0x70] sm:$0xff] }
  0xff   : > { %806 = vst [vmem:[%s1287_s7 + $0x28] sm:$0xff] %v774_v22  ;;  %v630_v27 = vsel %vm566_vm15, %v502_v12, %v598_v19  ;;  %vm571_vm1 = vcmp.ge.f32.partialorder %v523_v21, 0.0  ;;  %v603_v28 = vmul.f32 0.2, %v523_v21  ;;  %v515_v30 = vadd.f32 %v1259_v18, %v514_v16 }
 0x100   : > { %v694_v31 = vmul.f32 %v662_v20, %v630_v27  ;;  %v619_v32 = vsel %vm555_vm0, %v459_v15, %v587_v23  ;;  %vm553_vm2 = vcmp.ge.f32.partialorder %v451_v25, 0.0  ;;  %v585_v33 = vmul.f32 0.2, %v451_v25  ;;  %v466_v15 = vpop.f32.mrf.mxu0  ;;  %v530_v20 = vpop.f32.mrf.mxu1 }
 0x101   : > { %v683_v36 = vmul.f32 %v651_v24, %v619_v32  ;;  %v635_v37 = vsel %vm571_vm1, %v523_v21, %v603_v28  ;;  %vm569_vm3 = vcmp.ge.f32.partialorder %v515_v30, 0.0  ;;  %v601_v38 = vmul.f32 0.2, %v515_v30 }
 0x102   : > { %vm726_vm4 = vcmp.ge.f32.partialorder %v694_v31, 0.0  ;;  %v758_v40 = vmul.f32 0.2, %v694_v31  ;;  %v699_v41 = vmul.f32 %v667_v29, %v635_v37  ;;  %v617_v42 = vsel %vm553_vm2, %v451_v25, %v585_v33  ;;  %v671_v37 = vld [vmem:[%s1483_s3 + $0xf0] sm:$0xff] }
 0x103   : > { %vm715_vm5 = vcmp.ge.f32.partialorder %v683_v36, 0.0  ;;  %v747_v44 = vmul.f32 0.2, %v683_v36  ;;  %v681_v45 = vmul.f32 %v649_v34, %v617_v42  ;;  %v633_v46 = vsel %vm569_vm3, %v515_v30, %v601_v38  ;;  %v994_v30 = vpop.f32.mrf.mxu0  ;;  %v1010_v34 = vpop.f32.mrf.mxu1 }
 0x104   : > { %v790_v47 = vsel %vm726_vm4, %v694_v31, %v758_v40  ;;  %vm731_vm6 = vcmp.ge.f32.partialorder %v699_v41, 0.0  ;;  %v763_v48 = vmul.f32 0.2, %v699_v41  ;;  %v697_v49 = vmul.f32 %v665_v39, %v633_v46 }
 0x105   : > { %822 = vst [vmem:[%s1287_s7 + $0xa8] sm:$0xff] %v790_v47  ;;  %v779_v51 = vsel %vm715_vm5, %v683_v36, %v747_v44  ;;  %vm713_vm7 = vcmp.ge.f32.partialorder %v681_v45, 0.0  ;;  %v745_v52 = vmul.f32 0.2, %v681_v45  ;;  %v462_v53 = vadd.f32 %v990_v26, %v1259_v18 }
 0x106   : > { %811 = vst [vmem:[%s1287_s7 + $0x50] sm:$0xff] %v779_v51  ;;  %v795_v54 = vsel %vm731_vm6, %v699_v41, %v763_v48  ;;  %vm729_vm8 = vcmp.ge.f32.partialorder %v697_v49, 0.0  ;;  %v761_v55 = vmul.f32 0.2, %v697_v49  ;;  %v526_v56 = vadd.f32 %v1006_v35, %v1259_v18  ;;  %v653_v41 = vld [vmem:[%s1483_s3 + $0x60] sm:$0xff] }
 0x107   : > { %827 = vst [vmem:[%s1287_s7 + $0xd0] sm:$0xff] %v795_v54  ;;  %v777_v58 = vsel %vm713_vm7, %v681_v45, %v745_v52  ;;  %vm556_vm9 = vcmp.ge.f32.partialorder %v462_v53, 0.0  ;;  %v588_v59 = vmul.f32 0.2, %v462_v53  ;;  %v454_v61 = vadd.f32 %v1259_v18, %v453_v43  ;;  %v669_v45 = vld [vmem:[%s1483_s3 + $0xe0] sm:$0xff]  ;;  %v672_v54 = vld [vmem:[%s1483_s3 + $0xf8] sm:$0xff] }
 0x108   : > { %809 = vst [vmem:[%s1287_s7 + $0x40] sm:$0xff] %v777_v58  ;;  %v793_v62 = vsel %vm729_vm8, %v697_v49, %v761_v55  ;;  %vm572_vm10 = vcmp.ge.f32.partialorder %v526_v56, 0.0  ;;  %v604_v63 = vmul.f32 0.2, %v526_v56  ;;  %v518_v1 = vadd.f32 %v1259_v18, %v517_v50  ;;  %v656_v50 = vld [vmem:[%s1483_s3 + $0x78] sm:$0xff]  ;;  %v469_v58 = vpop.f32.mrf.mxu0 }
 0x109   : > { %825 = vst [vmem:[%s1287_s7 + $0xc0] sm:$0xff] %v793_v62  ;;  %v620_v3 = vsel %vm556_vm9, %v462_v53, %v588_v59  ;;  %vm554_vm11 = vcmp.ge.f32.partialorder %v454_v61, 0.0  ;;  %v586_v4 = vmul.f32 0.2, %v454_v61  ;;  %v475_v6 = vadd.f32 %v993_v57, %v1259_v18  ;;  %v533_v62 = vpop.f32.mrf.mxu1 }
 0x10a   : > { %v684_v7 = vmul.f32 %v652_v60, %v620_v3  ;;  %v636_v8 = vsel %vm572_vm10, %v526_v56, %v604_v63  ;;  %vm570_vm12 = vcmp.ge.f32.partialorder %v518_v1, 0.0  ;;  %v602_v9 = vmul.f32 0.2, %v518_v1 }
 0x10b   : > { %v700_v11 = vmul.f32 %v668_v0, %v636_v8  ;;  %v618_v12 = vsel %vm554_vm11, %v454_v61, %v586_v4  ;;  %vm559_vm13 = vcmp.ge.f32.partialorder %v475_v6, 0.0  ;;  %v591_v13 = vmul.f32 0.2, %v475_v6 }
 0x10c   : > { %vm716_vm14 = vcmp.ge.f32.partialorder %v684_v7, 0.0  ;;  %v748_v16 = vmul.f32 0.2, %v684_v7  ;;  %v682_v17 = vmul.f32 %v650_v5, %v618_v12  ;;  %v634_v19 = vsel %vm570_vm12, %v518_v1, %v602_v9 }
 0x10d   : > { %vm732_vm15 = vcmp.ge.f32.partialorder %v700_v11, 0.0  ;;  %v764_v21 = vmul.f32 0.2, %v700_v11  ;;  %v698_v22 = vmul.f32 %v666_v10, %v634_v19  ;;  %v623_v23 = vsel %vm559_vm13, %v475_v6, %v591_v13  ;;  %v654_v10 = vld [vmem:[%s1483_s3 + $0x68] sm:$0xff] }
 0x10e   : > { %v780_v24 = vsel %vm716_vm14, %v684_v7, %v748_v16  ;;  %vm714_vm0 = vcmp.ge.f32.partialorder %v682_v17, 0.0  ;;  %v746_v25 = vmul.f32 0.2, %v682_v17  ;;  %v687_v26 = vmul.f32 %v655_v14, %v623_v23  ;;  %v670_v13 = vld [vmem:[%s1483_s3 + $0xe8] sm:$0xff] }
 0x10f   : > { %812 = vst [vmem:[%s1287_s7 + $0x58] sm:$0xff] %v780_v24  ;;  %v796_v27 = vsel %vm732_vm15, %v700_v11, %v764_v21  ;;  %vm730_vm1 = vcmp.ge.f32.partialorder %v698_v22, 0.0  ;;  %v762_v28 = vmul.f32 0.2, %v698_v22  ;;  %v539_v29 = vadd.f32 %v1009_v2, %v1259_v18 }
 0x110   : > { %828 = vst [vmem:[%s1287_s7 + $0xd8] sm:$0xff] %v796_v27  ;;  %v778_v31 = vsel %vm714_vm0, %v682_v17, %v746_v25  ;;  %vm719_vm2 = vcmp.ge.f32.partialorder %v687_v26, 0.0  ;;  %v751_v32 = vmul.f32 0.2, %v687_v26  ;;  %v467_v33 = vadd.f32 %v1259_v18, %v466_v15 }
 0x111   : > { %810 = vst [vmem:[%s1287_s7 + $0x48] sm:$0xff] %v778_v31  ;;  %v794_v35 = vsel %vm730_vm1, %v698_v22, %v762_v28  ;;  %vm575_vm3 = vcmp.ge.f32.partialorder %v539_v29, 0.0  ;;  %v607_v36 = vmul.f32 0.2, %v539_v29  ;;  %v531_v38 = vadd.f32 %v1259_v18, %v530_v20 }
 0x112   : > { %826 = vst [vmem:[%s1287_s7 + $0xc8] sm:$0xff] %v794_v35  ;;  %v783_v39 = vsel %vm719_vm2, %v687_v26, %v751_v32  ;;  %vm557_vm4 = vcmp.ge.f32.partialorder %v467_v33, 0.0  ;;  %v589_v40 = vmul.f32 0.2, %v467_v33  ;;  %v478_v42 = vadd.f32 %v994_v30, %v1259_v18 }
 0x113   : > { %815 = vst [vmem:[%s1287_s7 + $0x70] sm:$0xff] %v783_v39  ;;  %v639_v43 = vsel %vm575_vm3, %v539_v29, %v607_v36  ;;  %vm573_vm5 = vcmp.ge.f32.partialorder %v531_v38, 0.0  ;;  %v605_v44 = vmul.f32 0.2, %v531_v38  ;;  %v542_v46 = vadd.f32 %v1010_v34, %v1259_v18 }
 0x114   : > { %v703_v47 = vmul.f32 %v671_v37, %v639_v43  ;;  %v621_v48 = vsel %vm557_vm4, %v467_v33, %v589_v40  ;;  %vm560_vm6 = vcmp.ge.f32.partialorder %v478_v42, 0.0  ;;  %v592_v49 = vmul.f32 0.2, %v478_v42 }
 0x115   : > { %v685_v51 = vmul.f32 %v653_v41, %v621_v48  ;;  %v637_v52 = vsel %vm573_vm5, %v531_v38, %v605_v44  ;;  %vm576_vm7 = vcmp.ge.f32.partialorder %v542_v46, 0.0  ;;  %v608_v53 = vmul.f32 0.2, %v542_v46 }
 0x116   : > { %vm735_vm8 = vcmp.ge.f32.partialorder %v703_v47, 0.0  ;;  %v767_v55 = vmul.f32 0.2, %v703_v47  ;;  %v701_v56 = vmul.f32 %v669_v45, %v637_v52  ;;  %v624_v57 = vsel %vm560_vm6, %v478_v42, %v592_v49 }
 0x117   : > { %vm717_vm9 = vcmp.ge.f32.partialorder %v685_v51, 0.0  ;;  %v749_v59 = vmul.f32 0.2, %v685_v51  ;;  %v688_v60 = vmul.f32 %v656_v50, %v624_v57  ;;  %v640_v61 = vsel %vm576_vm7, %v542_v46, %v608_v53 }
 0x118   : > { %v799_v63 = vsel %vm735_vm8, %v703_v47, %v767_v55  ;;  %vm733_vm10 = vcmp.ge.f32.partialorder %v701_v56, 0.0  ;;  %v765_v0 = vmul.f32 0.2, %v701_v56  ;;  %v704_v1 = vmul.f32 %v672_v54, %v640_v61 }
 0x119   : > { %831 = vst [vmem:[%s1287_s7 + $0xf0] sm:$0xff] %v799_v63  ;;  %v781_v2 = vsel %vm717_vm9, %v685_v51, %v749_v59  ;;  %vm720_vm11 = vcmp.ge.f32.partialorder %v688_v60, 0.0  ;;  %v752_v3 = vmul.f32 0.2, %v688_v60  ;;  %v470_v4 = vadd.f32 %v1259_v18, %v469_v58 }
 0x11a   : > { %813 = vst [vmem:[%s1287_s7 + $0x60] sm:$0xff] %v781_v2  ;;  %v797_v5 = vsel %vm733_vm10, %v701_v56, %v765_v0  ;;  %vm736_vm12 = vcmp.ge.f32.partialorder %v704_v1, 0.0  ;;  %v768_v6 = vmul.f32 0.2, %v704_v1  ;;  %v534_v7 = vadd.f32 %v1259_v18, %v533_v62 }
 0x11b   : > { %829 = vst [vmem:[%s1287_s7 + $0xe0] sm:$0xff] %v797_v5  ;;  %v784_v8 = vsel %vm720_vm11, %v688_v60, %v752_v3  ;;  %vm558_vm13 = vcmp.ge.f32.partialorder %v470_v4, 0.0  ;;  %v590_v9 = vmul.f32 0.2, %v470_v4 }
 0x11c   : > { %816 = vst [vmem:[%s1287_s7 + $0x78] sm:$0xff] %v784_v8  ;;  %v800_v11 = vsel %vm736_vm12, %v704_v1, %v768_v6  ;;  %vm574_vm14 = vcmp.ge.f32.partialorder %v534_v7, 0.0  ;;  %v606_v12 = vmul.f32 0.2, %v534_v7 }
 0x11d   : > { %832 = vst [vmem:[%s1287_s7 + $0xf8] sm:$0xff] %v800_v11  ;;  %v622_v18 = vsel %vm558_vm13, %v470_v4, %v590_v9 }
 0x11e   : > { %v686_v14 = vmul.f32 %v654_v10, %v622_v18  ;;  %v638_v15 = vsel %vm574_vm14, %v534_v7, %v606_v12 }
 0x11f   : > { %v702_v16 = vmul.f32 %v670_v13, %v638_v15 }
 0x120   : > { %vm718_vm15 = vcmp.ge.f32.partialorder %v686_v14, 0.0  ;;  %v750_v17 = vmul.f32 0.2, %v686_v14 }
 0x121   : > { %vm734_vm0 = vcmp.ge.f32.partialorder %v702_v16, 0.0  ;;  %v766_v19 = vmul.f32 0.2, %v702_v16 }
 0x122   : > { %v782_v20 = vsel %vm718_vm15, %v686_v14, %v750_v17 }
 0x123   : > { %814 = vst [vmem:[%s1287_s7 + $0x68] sm:$0xff] %v782_v20  ;;  %v798_v21 = vsel %vm734_vm0, %v702_v16, %v766_v19 }
 0x124   : > { %830 = vst [vmem:[%s1287_s7 + $0xe8] sm:$0xff] %v798_v21 }
 0x125   : > { %1087 = shalt.err (!%p1084_p3)
}
 0x126   : > { %s1088_s12 = scalar_lea.hbm %s1432_s5, 4096  ;;  %s1092_s13 = scalar_lea.hbm %s1484_s4, 8192 }
 0x127   : > { %p1089_p4 = scmp.ne.s32.totalorder %s1432_s5, %s1088_s12  ;;  %p1093_p9 = scmp.lt.s32.totalorder %s1432_s5, %s1484_s4 }
 0x128   : > { %p1094_p10 = scmp.lt.s32.totalorder %s1092_s13, %s1088_s12 }
 0x129   : > { %p1090_p7 = pnand %p1089_p4, %p1202_p5 }
 0x12a   : > { %p1095_p11 = por %p1094_p10, %p1093_p9 }
 0x12b   : > { %p1091_p8 = pneg %p1090_p7 }
 0x12d   : > { %p1096_p12 = pnand %p1095_p11, %p1091_p8 }
 0x12f   : > { %1099 = shalt.err (!%p1096_p12)
}
 0x130   : > { %s1137_s22 = smov 128   ;;  %s1138_s23 = smov 8  }
 0x131   : > { %1015 = dma.vmem_to_hbm [thread:$0]  (%p1202_p5), %s1434_s28, 4096, %s1432_s5, %s1440_s19, %s1137_s22, %s1137_s22, %s1138_s23  }
 0x132 PF: > { %p1021_p13 = scmp.ge.s32.totalorder %s1134_s18, 2  ;;  %s862_s27 = sand.u32 1, %s1122_s15  }
 0x133   : > { %s863_s29 = scalar_lea.sflag [#allocation3], %s862_s27 }
 0x134   : > { %p1018_p0 = pnand %p1021_p13, %p1206_p6 }
 0x136   : > { %p1019_p1 = pneg %p1018_p0 }
 0x138   : > { %1117 = dma.done.wait (%p1019_p1), %s863_s29, 4096  }
 0x139   : > { %1119 = vsyncadd (%p1019_p1), %s863_s29, 4294963200  ;;  %p14_p2 = scmp.ge.s32.totalorder %s1189_s21, 4   ;;  %s1487_s15 = smov %s1126_s16 }
 0x13a   : > { %s1488_s16 = smov %s1130_s17  ;;  %s1489_s17 = smov %s1200_s24 }
 0x13b   : > { %s1490_s18 = smov %s1189_s21  ;;  %16 = sbr.rel (!%p14_p2) target bundleno = 3 (0x3), region = 71 }
 0x140   :  { %868 = vsyncpa [#allocation3], 1 }
 0x141   :  { %870 = vsyncpa [#allocation3 + $0x1], 1 }

</bundles_post_ra>
